<compile_context>
chip_gen: v5e
topology: v5e:2x2
jax: 0.10.0
libtpu: 0.0.40
codegen_flags: <defaults>
</compile_context>

<pallas_src>
import functools

import jax
import jax.numpy as jnp
from jax.experimental import pallas as pl
from jax.experimental.pallas import tpu as pltpu

BN_EPS = 1e-5
_LANE = 128
_SUBLANE = 8


def _round_up(x, m):
    return (x + m - 1) // m * m


def film_linear_kernel(
    x_ref,    # (TB, In)        activation tile (compute dtype)
    c_ref,    # (TB, C)         condition tile (compute dtype)
    wl_ref,   # (In, Out_pad)   core linear weight, zero-padded cols (resident)
    bl_ref,   # (1, Out_pad)    fp32
    w0_ref,   # (C, H)          FiLM hidden weight, BN pre-folded (resident)
    b0_ref,   # (1, H)          fp32
    w1_ref,   # (H, 2*Out_pad)  fused FiLM head [factor | shift] (resident)
    b1_ref,   # (1, 2*Out_pad)  fp32
    o_ref,    # (TB, Out_pad)   fp32 output tile
    *,
    out_pad,
):
    f32 = jnp.float32

    # FiLM conditioning net: (BN-folded) Linear -> ReLU   (one MXU pass).
    h = jnp.dot(c_ref[...], w0_ref[...], preferred_element_type=f32)
    h = jnp.maximum(h + b0_ref[...], 0.0)

    # Fused FiLM head: single (H, 2*Out_pad) MXU pass + one tanh (EUP) stream.
    mod = jnp.dot(h.astype(w1_ref.dtype), w1_ref[...], preferred_element_type=f32)
    mod = jnp.tanh(mod + b1_ref[...])

    # Core linear layer on the actual input.
    out = jnp.dot(x_ref[...], wl_ref[...], preferred_element_type=f32)
    out = out + bl_ref[...]

    # FiLM modulation.  out_pad is a multiple of 128, so both slices are
    # vreg-lane aligned (value slices, no XLU work).  The 2x tanh scale is
    # hoisted here so it only touches Out_pad lanes instead of 2*Out_pad.
    factor = mod[:, :out_pad]
    shift = mod[:, out_pad:]
    o_ref[...] = 2.0 * (factor * out + shift)


def prepare_film_params(params, *, compute_dtype=jnp.float32):
    """One-time weight preparation: transpose to (in, out) layout, fold
    inference-mode BatchNorm into the first FiLM linear, zero-pad the output
    dimension to a lane-dense multiple of 128, and optionally cast the matmul
    weights to bf16.  Call once and reuse."""
    (wl, bl, w0, b0, bn_g, bn_b, bn_mu, bn_var, w1, b1) = params
    out_f, in_f = wl.shape
    hid = w0.shape[0]
    out_pad = _round_up(out_f, _LANE)

    # Fold inference-mode BatchNorm into the first FiLM linear:
    #   W0' = W0^T * g*rsqrt(var+eps),  b0' = (b0 - mu)*g*rsqrt(var+eps) + beta
    scale = bn_g / jnp.sqrt(bn_var + BN_EPS)                     # (H,)
    w0_t = (w0.T * scale[None, :]).astype(compute_dtype)         # (C, H)
    b0_p = ((b0 - bn_mu) * scale + bn_b).reshape(1, -1).astype(jnp.float32)

    # Core linear: transpose and zero-pad columns -> lane-dense output stores.
    wl_t = jnp.zeros((in_f, out_pad), compute_dtype)
    wl_t = wl_t.at[:, :out_f].set(wl.T.astype(compute_dtype))    # (In, Out_pad)
    bl_p = jnp.zeros((1, out_pad), jnp.float32).at[:, :out_f].set(bl)

    # Fused FiLM head: factor block in cols [:Out_pad], shift block after it,
    # so the in-kernel split is a 128-lane-aligned value slice.
    w1_t = w1.T.astype(compute_dtype)                            # (H, 2*Out)
    w1_p = jnp.zeros((hid, 2 * out_pad), compute_dtype)
    w1_p = w1_p.at[:, :out_f].set(w1_t[:, :out_f])
    w1_p = w1_p.at[:, out_pad:out_pad + out_f].set(w1_t[:, out_f:])
    b1_p = jnp.zeros((1, 2 * out_pad), jnp.float32)
    b1_p = b1_p.at[:, :out_f].set(b1[:out_f])
    b1_p = b1_p.at[:, out_pad:out_pad + out_f].set(b1[out_f:])

    return dict(
        wl=wl_t, bl=bl_p, w0=w0_t, b0=b0_p, w1=w1_p, b1=b1_p,
        out_features=out_f, out_pad=out_pad, compute_dtype=compute_dtype,
    )


def film_conditional_linear(x, cond, prepared, *, block_batch=2048):
    """FiLM conditional linear forward.  `prepared` comes from
    prepare_film_params.  The batch is gridded (weights VMEM-resident across
    grid steps via constant index_maps); the grid axis is marked parallel so
    v7x can split it across both TensorCores."""
    wl_t, bl = prepared["wl"], prepared["bl"]
    w0_t, b0 = prepared["w0"], prepared["b0"]
    w1_t, b1 = prepared["w1"], prepared["b1"]
    out_f = prepared["out_features"]
    out_pad = prepared["out_pad"]
    compute_dtype = prepared["compute_dtype"]

    batch = x.shape[0]
    in_f = wl_t.shape[0]
    cond_f = w0_t.shape[0]

    x = x.astype(compute_dtype)
    cond = cond.astype(compute_dtype)

    # --- batch tile selection -------------------------------------------------
    #  * >= 2 grid blocks whenever the batch permits, so ("parallel",) actually
    #    shards across v7x's two TensorCores,
    #  * tiles up to block_batch rows so the ~600-cycle per-step pipeline
    #    overhead is amortized, always a multiple of 8 sublanes.
    if batch <= _SUBLANE:
        tb = batch
    else:
        tb = min(block_batch, _round_up(pl.cdiv(batch, 2), _SUBLANE))

    # --- VMEM budgeting (v7x: 64 MiB physical; v5e/v6e: 128 MiB) ---------------
    def nbytes(a):
        return a.size * a.dtype.itemsize

    resident = sum(nbytes(a) for a in (wl_t, bl, w0_t, b0, w1_t, b1))
    act_itemsize = jnp.dtype(compute_dtype).itemsize

    def tile_bytes(t):
        # double-buffered x/cond input tiles + double-buffered fp32 output tile
        return 2 * t * (in_f + cond_f) * act_itemsize + 2 * t * out_pad * 4

    vmem_cap = 48 * 1024 * 1024  # leave headroom under v7x's 64 MiB physical
    while resident + tile_bytes(tb) > vmem_cap and tb > _SUBLANE:
        tb = max(_SUBLANE, _round_up(tb // 2, _SUBLANE))
    # TODO(synk): if the resident weights alone exceed the VMEM budget, grid
    # the Out dimension of wl/w1 as a second grid axis instead of shrinking tb.
    vmem_limit = min(
        max(int((resident + tile_bytes(tb)) * 1.25) + (4 << 20), 32 << 20),
        64 << 20,
    )

    n_blocks = pl.cdiv(batch, tb)  # partial last block is handled by Pallas

    def act_spec(feat):
        return pl.BlockSpec((tb, feat), lambda i: (i, 0))

    def resident_spec(arr):
        # Constant index_map -> weight stays VMEM-resident across grid steps.
        return pl.BlockSpec(arr.shape, lambda i: (0, 0))

    kernel = functools.partial(film_linear_kernel, out_pad=out_pad)

    out = pl.pallas_call(
        kernel,
        out_shape=jax.ShapeDtypeStruct((batch, out_pad), jnp.float32),
        grid=(n_blocks,),
        in_specs=[
            act_spec(in_f),            # x tile
            act_spec(cond_f),          # cond tile
            resident_spec(wl_t),
            resident_spec(bl),
            resident_spec(w0_t),
            resident_spec(b0),
            resident_spec(w1_t),
            resident_spec(b1),
        ],
        out_specs=act_spec(out_pad),   # lane-dense (multiple of 128) stores
        compiler_params=pltpu.CompilerParams(
            dimension_semantics=("parallel",),   # megacore sharding on v7x
            vmem_limit_bytes=vmem_limit,
        ),
    )(x, cond, wl_t, bl, w0_t, b0, w1_t, b1)

    return out[:, :out_f] if out_pad != out_f else out


def film_conditional_linear_ref(x, cond, params):
    """Pure-JAX reference (raw PyTorch-layout params) for correctness checks."""
    (wl, bl, w0, b0, bn_g, bn_b, bn_mu, bn_var, w1, b1) = params
    out_features = wl.shape[0]
    h = cond @ w0.T + b0
    h = (h - bn_mu) / jnp.sqrt(bn_var + BN_EPS) * bn_g + bn_b
    h = jnp.maximum(h, 0.0)
    modifier = 2.0 * jnp.tanh(h @ w1.T + b1)
    out = x @ wl.T + bl
    factor = modifier[:, :out_features]
    bias = modifier[:, out_features:]
    return factor * out + bias


def init_params(key, in_features, out_features, condition_features, film_hidden):
    """Deterministic parameter init mimicking nn.Linear default (uniform)."""
    ks = jax.random.split(key, 8)

    def linear_init(kw, kb, fan_in, fan_out):
        bound = 1.0 / jnp.sqrt(fan_in)
        w = jax.random.uniform(kw, (fan_out, fan_in), jnp.float32, -bound, bound)
        b = jax.random.uniform(kb, (fan_out,), jnp.float32, -bound, bound)
        return w, b

    wl, bl = linear_init(ks[0], ks[1], in_features, out_features)
    w0, b0 = linear_init(ks[2], ks[3], condition_features, film_hidden)
    w1, b1 = linear_init(ks[4], ks[5], film_hidden, 2 * out_features)

    # BatchNorm1d parameters: non-trivial deterministic running stats.
    bn_g = 1.0 + 0.1 * jax.random.normal(ks[6], (film_hidden,), jnp.float32)
    bn_b = 0.1 * jax.random.normal(ks[7], (film_hidden,), jnp.float32)
    bn_mu = jnp.linspace(-0.2, 0.2, film_hidden, dtype=jnp.float32)
    bn_var = jnp.linspace(0.8, 1.2, film_hidden, dtype=jnp.float32)

    return (wl, bl, w0, b0, bn_g, bn_b, bn_mu, bn_var, w1, b1)


if __name__ == "__main__":
    in_features = 32
    out_features = 32
    condition_features = 16
    film_hidden = 128  # film_units=[128]

    key = jax.random.PRNGKey(0)
    kx, kc, kp = jax.random.split(key, 3)
    params = init_params(kp, in_features, out_features, condition_features, film_hidden)

    # ---- strict fp32 check (single block, batch=8) ---------------------------
    batch = 8
    x = jax.random.normal(kx, (batch, in_features), jnp.float32)
    cond = jax.random.normal(kc, (batch, condition_features), jnp.float32)

    prepared_f32 = prepare_film_params(params, compute_dtype=jnp.float32)
    out = jax.block_until_ready(film_conditional_linear(x, cond, prepared_f32))
    ref = film_conditional_linear_ref(x, cond, params)
    assert out.shape == (batch, out_features)
    assert jnp.allclose(out, ref, atol=1e-5, rtol=1e-5), (
        f"fp32 max abs err {jnp.max(jnp.abs(out - ref))}"
    )

    # ---- multi-block fp32 check (2 grid blocks, partial last block) ----------
    batch2 = 24
    x2 = jax.random.normal(kx, (batch2, in_features), jnp.float32)
    cond2 = jax.random.normal(kc, (batch2, condition_features), jnp.float32)
    out2 = jax.block_until_ready(film_conditional_linear(x2, cond2, prepared_f32))
    ref2 = film_conditional_linear_ref(x2, cond2, params)
    assert out2.shape == (batch2, out_features)
    assert jnp.allclose(out2, ref2, atol=1e-5, rtol=1e-5), (
        f"fp32 grid max abs err {jnp.max(jnp.abs(out2 - ref2))}"
    )

    # ---- bf16 MXU path (fp32 accumulation), relaxed tolerance -----------------
    prepared_bf16 = prepare_film_params(params, compute_dtype=jnp.bfloat16)
    out_bf = jax.block_until_ready(film_conditional_linear(x2, cond2, prepared_bf16))
    assert out_bf.shape == (batch2, out_features)
    assert jnp.max(jnp.abs(out_bf - ref2)) < 1e-1, (
        f"bf16 max abs err {jnp.max(jnp.abs(out_bf - ref2))}"
    )

    print("KERNEL_OK")
</pallas_src>

<mosaic_0001>
module attributes {stable_mosaic.version = 11 : i64} {
  func.func @film_linear_kernel(%arg0: i32, %arg1: memref<8x32xf32, #tpu.memory_space<vmem>>, %arg2: memref<8x16xf32, #tpu.memory_space<vmem>>, %arg3: memref<32x128xf32, #tpu.memory_space<vmem>>, %arg4: memref<1x128xf32, #tpu.memory_space<vmem>>, %arg5: memref<16x128xf32, #tpu.memory_space<vmem>>, %arg6: memref<1x128xf32, #tpu.memory_space<vmem>>, %arg7: memref<128x256xf32, #tpu.memory_space<vmem>>, %arg8: memref<1x256xf32, #tpu.memory_space<vmem>>, %arg9: memref<8x128xf32, #tpu.memory_space<vmem>>) attributes {dimension_semantics = [#tpu.dimension_semantics<parallel>], iteration_bounds = array<i64: 1>, scalar_prefetch = 0 : i64, scratch_operands = 0 : i64, tpu.core_type = #tpu.core_type<tc>, window_params = [{transform_indices = @transform_0, window_bounds = array<i64: 8, 32>}, {transform_indices = @transform_1, window_bounds = array<i64: 8, 16>}, {pipeline_mode = #tpu.pipeline_mode<synchronous>, transform_indices = @transform_2, window_bounds = array<i64: 32, 128>}, {pipeline_mode = #tpu.pipeline_mode<synchronous>, transform_indices = @transform_3, window_bounds = array<i64: 1, 128>}, {pipeline_mode = #tpu.pipeline_mode<synchronous>, transform_indices = @transform_4, window_bounds = array<i64: 16, 128>}, {pipeline_mode = #tpu.pipeline_mode<synchronous>, transform_indices = @transform_5, window_bounds = array<i64: 1, 128>}, {pipeline_mode = #tpu.pipeline_mode<synchronous>, transform_indices = @transform_6, window_bounds = array<i64: 128, 256>}, {pipeline_mode = #tpu.pipeline_mode<synchronous>, transform_indices = @transform_7, window_bounds = array<i64: 1, 256>}, {transform_indices = @transform_8, window_bounds = array<i64: 8, 128>}]} {
    %c0 = arith.constant 0 : index
    %c0_0 = arith.constant 0 : index
    %0 = vector.load %arg2[%c0, %c0_0] : memref<8x16xf32, #tpu.memory_space<vmem>>, vector<8x16xf32>
    %c0_1 = arith.constant 0 : index
    %c0_2 = arith.constant 0 : index
    %1 = vector.load %arg5[%c0_1, %c0_2] : memref<16x128xf32, #tpu.memory_space<vmem>>, vector<16x128xf32>
    %cst = arith.constant dense<0.000000e+00> : vector<8x128xf32>
    %2 = tpu.matmul %0, %1, %cst {dimension_numbers = #tpu.dot_dimension_numbers<[1], [0], [0], [1], [0, 0, 1, 1], [], []>} : vector<8x16xf32>, vector<16x128xf32>, vector<8x128xf32> -> vector<8x128xf32>
    %c0_3 = arith.constant 0 : index
    %c0_4 = arith.constant 0 : index
    %3 = vector.load %arg6[%c0_3, %c0_4] : memref<1x128xf32, #tpu.memory_space<vmem>>, vector<1x128xf32>
    %4 = vector.broadcast %3 : vector<1x128xf32> to vector<8x128xf32>
    %5 = arith.addf %2, %4 : vector<8x128xf32>
    %cst_5 = arith.constant 0.000000e+00 : f32
    %6 = vector.broadcast %cst_5 : f32 to vector<8x128xf32>
    %7 = arith.maximumf %5, %6 : vector<8x128xf32>
    %c0_6 = arith.constant 0 : index
    %c0_7 = arith.constant 0 : index
    %8 = vector.load %arg7[%c0_6, %c0_7] : memref<128x256xf32, #tpu.memory_space<vmem>>, vector<128x256xf32>
    %cst_8 = arith.constant dense<0.000000e+00> : vector<8x256xf32>
    %9 = tpu.matmul %7, %8, %cst_8 {dimension_numbers = #tpu.dot_dimension_numbers<[1], [0], [0], [1], [0, 0, 1, 1], [], []>} : vector<8x128xf32>, vector<128x256xf32>, vector<8x256xf32> -> vector<8x256xf32>
    %c0_9 = arith.constant 0 : index
    %c0_10 = arith.constant 0 : index
    %10 = vector.load %arg8[%c0_9, %c0_10] : memref<1x256xf32, #tpu.memory_space<vmem>>, vector<1x256xf32>
    %11 = vector.broadcast %10 : vector<1x256xf32> to vector<8x256xf32>
    %12 = arith.addf %9, %11 : vector<8x256xf32>
    %13 = math.tanh %12 : vector<8x256xf32>
    %c0_11 = arith.constant 0 : index
    %c0_12 = arith.constant 0 : index
    %14 = vector.load %arg1[%c0_11, %c0_12] : memref<8x32xf32, #tpu.memory_space<vmem>>, vector<8x32xf32>
    %c0_13 = arith.constant 0 : index
    %c0_14 = arith.constant 0 : index
    %15 = vector.load %arg3[%c0_13, %c0_14] : memref<32x128xf32, #tpu.memory_space<vmem>>, vector<32x128xf32>
    %cst_15 = arith.constant dense<0.000000e+00> : vector<8x128xf32>
    %16 = tpu.matmul %14, %15, %cst_15 {dimension_numbers = #tpu.dot_dimension_numbers<[1], [0], [0], [1], [0, 0, 1, 1], [], []>} : vector<8x32xf32>, vector<32x128xf32>, vector<8x128xf32> -> vector<8x128xf32>
    %c0_16 = arith.constant 0 : index
    %c0_17 = arith.constant 0 : index
    %17 = vector.load %arg4[%c0_16, %c0_17] : memref<1x128xf32, #tpu.memory_space<vmem>>, vector<1x128xf32>
    %18 = vector.broadcast %17 : vector<1x128xf32> to vector<8x128xf32>
    %19 = arith.addf %16, %18 : vector<8x128xf32>
    %20 = vector.extract_strided_slice %13 {offsets = [0, 0], sizes = [8, 128], strides = [1, 1]} : vector<8x256xf32> to vector<8x128xf32>
    %21 = vector.extract_strided_slice %13 {offsets = [0, 128], sizes = [8, 128], strides = [1, 1]} : vector<8x256xf32> to vector<8x128xf32>
    %22 = arith.mulf %20, %19 : vector<8x128xf32>
    %23 = arith.addf %22, %21 : vector<8x128xf32>
    %cst_18 = arith.constant 2.000000e+00 : f32
    %24 = vector.broadcast %cst_18 : f32 to vector<8x128xf32>
    %25 = arith.mulf %24, %23 : vector<8x128xf32>
    %c0_19 = arith.constant 0 : index
    %c0_20 = arith.constant 0 : index
    %26 = vector.load %arg9[%c0_19, %c0_20] : memref<8x128xf32, #tpu.memory_space<vmem>>, vector<8x128xf32>
    tpu.vector_store %arg9[%c0_19, %c0_20], %25 {strides = array<i32>} : memref<8x128xf32, #tpu.memory_space<vmem>>, vector<8x128xf32>,
    return
  }
  func.func @transform_0(%arg0: i32) -> (i32, i32) {
    %c0_i32 = arith.constant 0 : i32
    %c0_i32_0 = arith.constant 0 : i32
    return %arg0, %c0_i32 : i32, i32
  }
  func.func @transform_1(%arg0: i32) -> (i32, i32) {
    %c0_i32 = arith.constant 0 : i32
    %c0_i32_0 = arith.constant 0 : i32
    return %arg0, %c0_i32 : i32, i32
  }
  func.func @transform_2(%arg0: i32) -> (i32, i32) {
    %c0_i32 = arith.constant 0 : i32
    %c0_i32_0 = arith.constant 0 : i32
    %c0_i32_1 = arith.constant 0 : i32
    return %c0_i32, %c0_i32_0 : i32, i32
  }
  func.func @transform_3(%arg0: i32) -> (i32, i32) {
    %c0_i32 = arith.constant 0 : i32
    %c0_i32_0 = arith.constant 0 : i32
    %c0_i32_1 = arith.constant 0 : i32
    return %c0_i32, %c0_i32_0 : i32, i32
  }
  func.func @transform_4(%arg0: i32) -> (i32, i32) {
    %c0_i32 = arith.constant 0 : i32
    %c0_i32_0 = arith.constant 0 : i32
    %c0_i32_1 = arith.constant 0 : i32
    return %c0_i32, %c0_i32_0 : i32, i32
  }
  func.func @transform_5(%arg0: i32) -> (i32, i32) {
    %c0_i32 = arith.constant 0 : i32
    %c0_i32_0 = arith.constant 0 : i32
    %c0_i32_1 = arith.constant 0 : i32
    return %c0_i32, %c0_i32_0 : i32, i32
  }
  func.func @transform_6(%arg0: i32) -> (i32, i32) {
    %c0_i32 = arith.constant 0 : i32
    %c0_i32_0 = arith.constant 0 : i32
    %c0_i32_1 = arith.constant 0 : i32
    return %c0_i32, %c0_i32_0 : i32, i32
  }
  func.func @transform_7(%arg0: i32) -> (i32, i32) {
    %c0_i32 = arith.constant 0 : i32
    %c0_i32_0 = arith.constant 0 : i32
    %c0_i32_1 = arith.constant 0 : i32
    return %c0_i32, %c0_i32_0 : i32, i32
  }
  func.func @transform_8(%arg0: i32) -> (i32, i32) {
    %c0_i32 = arith.constant 0 : i32
    %c0_i32_0 = arith.constant 0 : i32
    return %arg0, %c0_i32 : i32, i32
  }
}

</mosaic_0001>

<bundles_post_ra>
// kernel: tpu_custom_call.1
= control target key start
LH: loop header
LB: loop body
LE: loop exit
PB: predicated region body
PF: predicated region fallthrough
CT: control target
= control target key end

     0   :  { %13 = vsyncpa [#allocation3], 0  ;;  %s524_s0 = inlined_call_operand.hbm [shape: f32[8,32], index: 0, kind: input, shape index: {}]   ;;  %s525_s1 = inlined_call_operand.hbm [shape: f32[8,16], index: 1, kind: input, shape index: {}]   ;;  %s526_s2 = inlined_call_operand.hbm [shape: f32[32,128], index: 2, kind: input, shape index: {}]   ;;  %s527_s3 = inlined_call_operand.vmem [shape: f32[1,128], index: 3, kind: input, shape index: {}]   ;;  %s528_s4 = inlined_call_operand.hbm [shape: f32[16,128], index: 4, kind: input, shape index: {}]   ;;  %s529_s5 = inlined_call_operand.vmem [shape: f32[1,128], index: 5, kind: input, shape index: {}]   ;;  %s530_s6 = inlined_call_operand.hbm [shape: f32[128,256], index: 6, kind: input, shape index: {}]   ;;  %s531_s7 = inlined_call_operand.vmem [shape: f32[1,256], index: 7, kind: input, shape index: {}]   ;;  %s532_s8 = inlined_call_operand.hbm [shape: f32[8,128], index: 8, kind: output, shape index: {}]  }
   0x1   :  { %14 = vsyncpa [#allocation6], 0 }
   0x2   :  { %15 = vsyncpa [#allocation9], 0  ;;  %s33_s29 = sshll.u32 %s525_s1, 4  ;;  %s34_s29 = int_to_ptr.hbm [resolvable:$true] %s33_s29 }
   0x3   :  { %16 = vsyncpa [#allocation4], 0  ;;  %s442_s30 = smov [#allocation5]   ;;  %s58_s12 = sshll.u32 %s528_s4, 4  ;;  %s59_s12 = int_to_ptr.hbm [resolvable:$true] %s58_s12 }
   0x4   :  { %s35_s9 = sshll.u32 %s442_s30, 4  ;;  %s443_s13 = smov [#allocation8]   ;;  %s36_s9 = int_to_ptr.vmem [resolvable:$true] %s35_s9 }
   0x5   :  { %38 = dma.hbm_to_vmem [thread:$0]  %s34_s29, 128, %s36_s9, [#allocation6]  }
   0x6   :  { %s60_s14 = sshll.u32 %s443_s13, 4  ;;  %s22_s17 = sshll.u32 %s524_s0, 4  ;;  %s61_s14 = int_to_ptr.vmem [resolvable:$true] %s60_s14  ;;  %s23_s17 = int_to_ptr.hbm [resolvable:$true] %s22_s17 }
   0x7   :  { %s444_s1 = smov 128   ;;  %s445_s18 = smov 8  }
   0x8   :  { %66 = dma.hbm_to_vmem [thread:$0]  %s59_s12, 256, %s61_s14, [#allocation9], %s444_s1, %s444_s1, %s445_s18  }
   0x9   :  { %s43_s21 = sshll.u32 %s526_s2, 4  ;;  %s446_s22 = smov [#allocation2]   ;;  %s44_s21 = int_to_ptr.hbm [resolvable:$true] %s43_s21 }
   0xa   :  { %s24_s23 = sshll.u32 %s446_s22, 4  ;;  %s447_s4 = smov [#allocation7]   ;;  %s25_s23 = int_to_ptr.vmem [resolvable:$true] %s24_s23 }
   0xb   :  { %27 = dma.hbm_to_vmem [thread:$0]  %s23_s17, 128, %s25_s23, [#allocation3]  }
   0xc   :  { %s45_s24 = sshll.u32 %s447_s4, 4  ;;  %s73_s0 = sshll.u32 %s530_s6, 4  ;;  %s46_s24 = int_to_ptr.vmem [resolvable:$true] %s45_s24  ;;  %s74_s0 = int_to_ptr.hbm [resolvable:$true] %s73_s0 }
   0xd   :  { %51 = dma.hbm_to_vmem [thread:$0]  %s44_s21, 512, %s46_s24, [#allocation6], %s444_s1, %s444_s1, %s445_s18  }
   0xe   :  { %s448_s27 = smov [#allocation10]   ;;  %s449_s29 = smov 256  }
   0xf   :  { %s75_s28 = sshll.u32 %s448_s27, 4  ;;  %s450_s30 = smov 16   ;;  %s76_s28 = int_to_ptr.vmem [resolvable:$true] %s75_s28 }
  0x10   :  { %81 = dma.hbm_to_vmem [thread:$0]  %s74_s0, 4096, %s76_s28, [#allocation9], %s449_s29, %s449_s29, %s450_s30  }
  0x11   :  { %434 = dma.done.wait [#allocation3], 128  }
  0x12   :  { %435 = vsyncadd [#allocation3], 4294967168 }
  0x13   :  { %436 = dma.done.wait [#allocation6], 640  }
  0x14   :  { %437 = vsyncadd [#allocation6], 4294966656 }
  0x15   :  { %438 = dma.done.wait [#allocation9], 4352  }
  0x16   :  { %439 = vsyncadd [#allocation9], 4294962944  ;;  %v106_v0 = vld [vmem:[#allocation8 + $0x8] sm:$0xff]  ;;  %v105_v1 = vld [vmem:[#allocation8] sm:$0xff]  ;;  %vm111_vm0 = vcmask 130048   ;;  %vm225_vm1 = vcmask 261120  }
  0x17   :  { %v104_v2 = vld [vmem:[#allocation5] sm:$0xff]  ;;  %129 = vmatpush.msra.mxu0 %v106_v0  ;;  %v166_v3 = vld [vmem:[#allocation10 + $0xf0] sm:$0xff]  ;;  %v167_v4 = vld [vmem:[#allocation10 + $0xf8] sm:$0xff]  ;;  %s260_s15 = sshll.u32 %s532_s8, 4  ;;  %s261_s15 = int_to_ptr.hbm [resolvable:$true] %s260_s15 }
  0x18   :  { %v164_v5 = vld [vmem:[#allocation10 + $0xe0] sm:$0xff]  ;;  %174 = vmatpush.msra.mxu1 %v166_v3  ;;  %194 = vmatpush.msra.mxu2 %v167_v4  ;;  %v165_v6 = vld [vmem:[#allocation10 + $0xe8] sm:$0xff]  ;;  %v162_v7 = vld [vmem:[#allocation10 + $0xd0] sm:$0xff] }
  0x19   :  { %130 = vmatpush.msra.mxu0 %v105_v1  ;;  %v163_v8 = vld [vmem:[#allocation10 + $0xd8] sm:$0xff]  ;;  %v160_v9 = vld [vmem:[#allocation10 + $0xc0] sm:$0xff]  ;;  %v161_v10 = vld [vmem:[#allocation10 + $0xc8] sm:$0xff] }
  0x1a   :  { %272 = vmatmul.msk.f32.vlgmr.msra.gmra.mxu0 %vm111_vm0, %v104_v2  ;;  %175 = vmatpush.msra.mxu1 %v164_v5  ;;  %v158_v11 = vld [vmem:[#allocation10 + $0xb0] sm:$0xff]  ;;  %v159_v12 = vld [vmem:[#allocation10 + $0xb8] sm:$0xff]  ;;  %v156_v13 = vld [vmem:[#allocation10 + $0xa0] sm:$0xff] }
  0x1b   :  { %195 = vmatpush.msra.mxu2 %v165_v6  ;;  %v220_v14 = vld [vmem:[#allocation7 + $0x18] sm:$0xff]  ;;  %v154_v16 = vld [vmem:[#allocation10 + $0x90] sm:$0xff]  ;;  %v155_v17 = vld [vmem:[#allocation10 + $0x98] sm:$0xff] }
  0x1c   :  { %176 = vmatpush.msra.mxu1 %v162_v7  ;;  %v157_v15 = vld [vmem:[#allocation10 + $0xa8] sm:$0xff]  ;;  %241 = vmatpush.msra.mxu3 %v220_v14  ;;  %v152_v18 = vld [vmem:[#allocation10 + $0x80] sm:$0xff]  ;;  %v150_v20 = vld [vmem:[#allocation10 + $0x70] sm:$0xff] }
  0x1d   :  { %196 = vmatpush.msra.mxu2 %v163_v8  ;;  %v153_v19 = vld [vmem:[#allocation10 + $0x88] sm:$0xff]  ;;  %v151_v21 = vld [vmem:[#allocation10 + $0x78] sm:$0xff]  ;;  %v148_v22 = vld [vmem:[#allocation10 + $0x60] sm:$0xff] }
  0x1e   :  { %177 = vmatpush.msra.mxu1 %v160_v9  ;;  %v149_v23 = vld [vmem:[#allocation10 + $0x68] sm:$0xff]  ;;  %v146_v24 = vld [vmem:[#allocation10 + $0x50] sm:$0xff]  ;;  %v147_v25 = vld [vmem:[#allocation10 + $0x58] sm:$0xff] }
  0x1f   :  { %197 = vmatpush.msra.mxu2 %v161_v10  ;;  %v144_v26 = vld [vmem:[#allocation10 + $0x40] sm:$0xff]  ;;  %v145_v27 = vld [vmem:[#allocation10 + $0x48] sm:$0xff]  ;;  %v142_v28 = vld [vmem:[#allocation10 + $0x30] sm:$0xff] }
  0x20   :  { %178 = vmatpush.msra.mxu1 %v158_v11  ;;  %v143_v29 = vld [vmem:[#allocation10 + $0x38] sm:$0xff]  ;;  %v140_v30 = vld [vmem:[#allocation10 + $0x20] sm:$0xff]  ;;  %v141_v31 = vld [vmem:[#allocation10 + $0x28] sm:$0xff] }
  0x21   :  { %198 = vmatpush.msra.mxu2 %v159_v12  ;;  %v219_v32 = vld [vmem:[#allocation7 + $0x10] sm:$0xff]  ;;  %v138_v33 = vld [vmem:[#allocation10 + $0x10] sm:$0xff]  ;;  %v139_v34 = vld [vmem:[#allocation10 + $0x18] sm:$0xff] }
  0x22   :  { %179 = vmatpush.msra.mxu1 %v156_v13  ;;  %242 = vmatpush.msra.mxu3 %v219_v32  ;;  %v218_v35 = vld [vmem:[#allocation7 + $0x8] sm:$0xff]  ;;  %v136_v36 = vld [vmem:[#allocation10] sm:$0xff]  ;;  %v137_v37 = vld [vmem:[#allocation10 + $0x8] sm:$0xff] }
  0x23   :  { %199 = vmatpush.msra.mxu2 %v157_v15  ;;  %v217_v38 = vld [vmem:[#allocation7] sm:$0xff]  ;;  %v216_v39 = vld [vmem:[#allocation2] sm:$0xff] }
  0x24   :  { %180 = vmatpush.msra.mxu1 %v154_v16  ;;  %243 = vmatpush.msra.mxu3 %v218_v35  ;;  %v284_v40 = vld [vmem:[%s529_s5] ss:$0 sm:$0xff]  ;;  %s451_s5 = smov [#allocation11]  }
  0x25   :  { %200 = vmatpush.msra.mxu2 %v155_v17  ;;  %v168_v44 = vld [vmem:[%s531_s7] sm:$0x3]  ;;  %s258_s13 = sshll.u32 %s451_s5, 4  ;;  %s259_s13 = int_to_ptr.vmem [resolvable:$true] %s258_s13 }
  0x26   :  { %181 = vmatpush.msra.mxu1 %v152_v18  ;;  %244 = vmatpush.msra.mxu3 %v217_v38  ;;  %v170_v45 = vperm.slane %v168_v44, 0  ;;  %v171_v48 = vperm.slane %v168_v44, 1  ;;  %v285_v50 = vld [vmem:[%s527_s3] ss:$0 sm:$0xff] }
  0x27   :  { %201 = vmatpush.msra.mxu2 %v153_v19  ;;  %273 = vmatmul.msk.f32.vlgmr.msra.gmra.mxu3 %vm225_vm1, %v216_v39 }
  0x28   :  { %182 = vmatpush.msra.mxu1 %v150_v20 }
  0x29   :  { %202 = vmatpush.msra.mxu2 %v151_v21 }
  0x2a   :  { %183 = vmatpush.msra.mxu1 %v148_v22 }
  0x2b   :  { %203 = vmatpush.msra.mxu2 %v149_v23 }
  0x2c   :  { %184 = vmatpush.msra.mxu1 %v146_v24 }
  0x2d   :  { %204 = vmatpush.msra.mxu2 %v147_v25 }
  0x2e   :  { %185 = vmatpush.msra.mxu1 %v144_v26 }
  0x2f   :  { %205 = vmatpush.msra.mxu2 %v145_v27 }
  0x30   :  { %186 = vmatpush.msra.mxu1 %v142_v28 }
  0x31   :  { %206 = vmatpush.msra.mxu2 %v143_v29 }
  0x32   :  { %187 = vmatpush.msra.mxu1 %v140_v30 }
  0x33   :  { %207 = vmatpush.msra.mxu2 %v141_v31 }
  0x34   :  { %188 = vmatpush.msra.mxu1 %v138_v33 }
  0x35   :  { %208 = vmatpush.msra.mxu2 %v139_v34 }
  0x36   :  { %189 = vmatpush.msra.mxu1 %v136_v36 }
  0x37   :  { %209 = vmatpush.msra.mxu2 %v137_v37 }
  0x97   :  { %v132_v41 = vpop.f32.mrf.mxu0 }
  0x98   :  { %v133_v42 = vadd.f32 %v284_v40, %v132_v41 }
  0x9a   :  { %v135_v43 = vmax.f32 %v133_v42, 0.0 }
  0x9c   :  { %190 = vmatmul.f32.vlgmr.msra.gmra.mxu1 %v135_v43  ;;  %210 = vmatmul.f32.vlgmr.msra.gmra.mxu2 %v135_v43 }
  0xaa   :  { %v246_v52 = vpop.f32.mrf.mxu3 }
  0xab   :  { %v247_v53 = vadd.f32 %v285_v50, %v246_v52 }
 0x119   :  { %v191_v46 = vpop.f32.mrf.mxu1 }
 0x11a   :  { %v192_v47 = vadd.f32 %v191_v46, %v170_v45 }
 0x11c   :  { %286 = vtanh.f32 %v192_v47 }
 0x11f   :  { %v211_v49 = vpop.f32.mrf.mxu2 }
 0x120   :  { %v212_v51 = vadd.f32 %v211_v49, %v171_v48 }
 0x122   :  { %288 = vtanh.f32 %v212_v51  ;;  %v287_v54 = vpop.eup %286 }
 0x123   :  { %v249_v55 = vmul.f32 %v287_v54, %v247_v53 }
 0x128   :  { %v289_v56 = vpop.eup %288 }
 0x129   :  { %v250_v57 = vadd.f32 %v289_v56, %v249_v55 }
 0x12b   :  { %v251_v58 = vmul.f32 2.0, %v250_v57 }
 0x12d   :  { %252 = vst [vmem:[#allocation11] sm:$0xff] %v251_v58 }
 0x12e   :  { %263 = dma.vmem_to_hbm [thread:$0]  %s259_s13, 128, %s261_s15, [#allocation4]  }
 0x12f   :  { %440 = dma.done.wait [#allocation4], 128  }
 0x130   :  { %441 = vsyncadd [#allocation4], 4294967168 }
 0x131   :  { %268 = vsyncpa [#allocation3], 1 }
 0x132   :  { %269 = vsyncpa [#allocation6], 1 }
 0x133   :  { %270 = vsyncpa [#allocation9], 1 }
 0x134   :  { %271 = vsyncpa [#allocation4], 1 }

</bundles_post_ra>
